<compile_context>
chip_gen: v5e
topology: v5e:2x2
jax: 0.10.0
libtpu: 0.0.40
codegen_flags: <defaults>
</compile_context>

<pallas_src>
import functools

import jax
import jax.numpy as jnp
import numpy as np
from jax.experimental import pallas as pl
from jax.experimental.pallas import tpu as pltpu


def _cdiv(a, b):
    return -(-a // b)


def _vmem_capacity_bytes():
    """Per-core VMEM capacity; platform-aware fallback if the query fails."""
    try:
        info = pltpu.get_tpu_info()
        cap = getattr(info, "vmem_capacity_bytes", None)
        if cap:
            return int(cap)
    except Exception:
        pass
    try:
        kind = jax.devices()[0].device_kind.lower()
        if "v7" in kind or "7x" in kind:
            return 64 * 1024 * 1024
    except Exception:
        pass
    return 128 * 1024 * 1024  # v5e / v6e


# ----------------------------- fused single pass -----------------------------


def _fused_kernel(x_ref, w1t_ref, b1_ref, w2t_ref, b2_ref, o_ref, *, inv_hw):
    # x_ref: (Bt, C, HW)   w1t: (C, Cr)  b1: (1, Cr)  w2t: (Cr, C)  b2: (1, C)
    xb = x_ref[...]
    # Spatial mean: lane-axis sum with f32 accumulation, scaled by static 1/HW.
    pooled = jnp.sum(xb, axis=-1, dtype=jnp.float32) * inv_hw          # (Bt, C)
    # fc1 + ReLU (tiny MXU matmul, hidden under the x DMA).
    h = jnp.dot(pooled, w1t_ref[...], preferred_element_type=jnp.float32)
    h = jnp.maximum(h + b1_ref[...], 0.0)                              # (Bt, Cr)
    # fc2 + Sigmoid (EUP).
    g = jnp.dot(h, w2t_ref[...], preferred_element_type=jnp.float32)
    g = jax.nn.sigmoid(g + b2_ref[...])                                # (Bt, C)
    # Broadcast the per-channel gate over the spatial (lane) axis.
    o_ref[...] = xb * g[:, :, None].astype(xb.dtype)


# --------------------------- two-pass fallback path ---------------------------


def _pool_rows_kernel(x_ref, o_ref, *, inv_hw):
    # x_ref: (Rt, HW);  o_ref: (Rt, 1) f32.  Full-HW rows: no tail masking.
    o_ref[...] = (
        jnp.sum(x_ref[...], axis=-1, keepdims=True, dtype=jnp.float32) * inv_hw
    )


def _gate_rows_kernel(x_ref, g_ref, o_ref):
    # x_ref: (Rt, HW);  g_ref: (Rt, 1)
    o_ref[...] = x_ref[...] * g_ref[...]


# --------------------------------- wrapper -----------------------------------


def channel_attention(x, w1, b1, w2, b2, *, force_two_pass=False):
    """x: (B, C, H, W).  w1: (C//4, C), b1: (C//4,), w2: (C, C//4), b2: (C,)."""
    B, C, H, W = x.shape
    Cr = w1.shape[0]
    HW = H * W
    itemsize = jnp.dtype(x.dtype).itemsize
    inv_hw = float(1.0 / HW)

    vmem_cap = _vmem_capacity_bytes()
    vmem_limit = int(min(vmem_cap // 2, 64 * 1024 * 1024))

    w1t = w1.T                                    # (C, Cr)
    w2t = w2.T                                    # (Cr, C)
    b1r = b1.reshape(1, Cr)
    b2r = b2.reshape(1, C)

    x3 = x.reshape(B, C, HW)                      # free view (contiguous)

    per_img = C * HW * itemsize
    weight_bytes = (2 * C * Cr + C + Cr) * 4
    # One image, in + out, each double-buffered, plus weights and slack for
    # f32 intermediates / compiler scratch.
    fused_need = 4 * per_img + 2 * weight_bytes + (1 << 20)
    use_fused = (not force_two_pass) and fused_need <= int(0.6 * vmem_limit)

    if use_fused:
        # --- block sizing: ~2 MiB per buffer, >= 2 (ideally >= 8) grid steps ---
        bt = max(1, min(B, (2 * 1024 * 1024) // max(per_img, 1)))
        bt_for_8_steps = max(1, _cdiv(B, 8))
        if bt_for_8_steps < bt:
            # shrink toward >= 8 steps, but keep blocks >= ~256 KiB
            bt = min(B, max(bt_for_8_steps, max(1, (256 * 1024) // max(per_img, 1))))
        if B > 1:
            bt = min(bt, _cdiv(B, 2))             # >= 2 steps for v7x megacore
        grid = (_cdiv(B, bt),)

        cost = pl.CostEstimate(
            flops=2 * B * C * HW + 4 * B * C * Cr,
            transcendentals=B * C,
            bytes_accessed=2 * B * C * HW * itemsize + weight_bytes,
        )
        out = pl.pallas_call(
            functools.partial(_fused_kernel, inv_hw=inv_hw),
            out_shape=jax.ShapeDtypeStruct((B, C, HW), x.dtype),
            grid_spec=pltpu.PrefetchScalarGridSpec(
                num_scalar_prefetch=0,
                grid=grid,
                in_specs=[
                    pl.BlockSpec((bt, C, HW), lambda b: (b, 0, 0)),
                    pl.BlockSpec((C, Cr), lambda b: (0, 0)),
                    pl.BlockSpec((1, Cr), lambda b: (0, 0)),
                    pl.BlockSpec((Cr, C), lambda b: (0, 0)),
                    pl.BlockSpec((1, C), lambda b: (0, 0)),
                ],
                out_specs=pl.BlockSpec((bt, C, HW), lambda b: (b, 0, 0)),
            ),
            compiler_params=pltpu.CompilerParams(
                dimension_semantics=("parallel",),
                vmem_limit_bytes=vmem_limit,
            ),
            cost_estimate=cost,
        )(x3, w1t, b1r, w2t, b2r)
        return out.reshape(B, C, H, W)

    # -------- two passes over x, row-tiled (B*C, HW) view, no padding --------
    nrows = B * C
    x2 = x3.reshape(nrows, HW)                    # free view
    per_row = HW * itemsize
    rt = max(8, ((2 * 1024 * 1024) // max(per_row, 1)) // 8 * 8)
    if nrows >= 8:
        rt = min(rt, (nrows // 8) * 8)            # keep block within the array
    else:
        rt = nrows                                # full-extent block (legal)
    grid = (_cdiv(nrows, rt),)
    cparams = pltpu.CompilerParams(
        dimension_semantics=("parallel",),
        vmem_limit_bytes=vmem_limit,
    )

    # Pass 1: per-row spatial mean.
    pooled = pl.pallas_call(
        functools.partial(_pool_rows_kernel, inv_hw=inv_hw),
        out_shape=jax.ShapeDtypeStruct((nrows, 1), jnp.float32),
        grid_spec=pltpu.PrefetchScalarGridSpec(
            num_scalar_prefetch=0,
            grid=grid,
            in_specs=[pl.BlockSpec((rt, HW), lambda r: (r, 0))],
            out_specs=pl.BlockSpec((rt, 1), lambda r: (r, 0)),
        ),
        compiler_params=cparams,
        cost_estimate=pl.CostEstimate(
            flops=B * C * HW,
            transcendentals=0,
            bytes_accessed=B * C * HW * itemsize + nrows * 4,
        ),
    )(x2)

    # Tiny FC + sigmoid in plain JAX (negligible vs. the two x passes).
    y = pooled.reshape(B, C)
    gate = jax.nn.sigmoid(jnp.maximum(y @ w1t + b1r, 0.0) @ w2t + b2r)
    gate = gate.astype(x.dtype).reshape(nrows, 1)

    # Pass 2: elementwise gate apply.
    out = pl.pallas_call(
        _gate_rows_kernel,
        out_shape=jax.ShapeDtypeStruct((nrows, HW), x.dtype),
        grid_spec=pltpu.PrefetchScalarGridSpec(
            num_scalar_prefetch=0,
            grid=grid,
            in_specs=[
                pl.BlockSpec((rt, HW), lambda r: (r, 0)),
                pl.BlockSpec((rt, 1), lambda r: (r, 0)),
            ],
            out_specs=pl.BlockSpec((rt, HW), lambda r: (r, 0)),
        ),
        compiler_params=cparams,
        cost_estimate=pl.CostEstimate(
            flops=B * C * HW,
            transcendentals=0,
            bytes_accessed=2 * B * C * HW * itemsize + nrows * itemsize,
        ),
    )(x2, gate)
    return out.reshape(B, C, H, W)


def channel_attention_ref(x, w1, b1, w2, b2):
    """Pure-JAX reference matching the PyTorch forward."""
    y = jnp.mean(x, axis=(2, 3))                 # (B, C)
    y = jnp.maximum(y @ w1.T + b1, 0.0)          # (B, C//4)
    y = jax.nn.sigmoid(y @ w2.T + b2)            # (B, C)
    return x * y[:, :, None, None]


if __name__ == "__main__":
    # Small but non-trivial shapes: HW = 144 (not a multiple of 128) exercises
    # the unpadded full-extent last dim; B = 3 exercises the cdiv batch grid.
    B, C, H, W = 3, 16, 12, 12
    Cr = C // 4

    key = jax.random.PRNGKey(0)
    kx, k1, k2, k3, k4 = jax.random.split(key, 5)

    x = jax.random.normal(kx, (B, C, H, W), dtype=jnp.float32)
    w1 = jax.random.normal(k1, (Cr, C), dtype=jnp.float32) * 0.1
    b1 = jax.random.normal(k2, (Cr,), dtype=jnp.float32) * 0.1
    w2 = jax.random.normal(k3, (C, Cr), dtype=jnp.float32) * 0.1
    b2 = jax.random.normal(k4, (C,), dtype=jnp.float32) * 0.1

    ref = channel_attention_ref(x, w1, b1, w2, b2)

    # Default (fused single-pass, batched cdiv grid) path.
    out = jax.block_until_ready(channel_attention(x, w1, b1, w2, b2))
    np.testing.assert_allclose(np.asarray(out), np.asarray(ref),
                               rtol=1e-5, atol=1e-5)

    # Force the two-pass (row-tiled) fallback used when C*HW exceeds VMEM.
    out2 = jax.block_until_ready(
        channel_attention(x, w1, b1, w2, b2, force_two_pass=True))
    np.testing.assert_allclose(np.asarray(out2), np.asarray(ref),
                               rtol=1e-5, atol=1e-5)

    print("KERNEL_OK")
</pallas_src>

<mosaic_0001>
module attributes {stable_mosaic.version = 11 : i64} {
  func.func @_fused_kernel(%arg0: i32, %arg1: memref<2x16x144xf32, #tpu.memory_space<vmem>>, %arg2: memref<16x4xf32, #tpu.memory_space<vmem>>, %arg3: memref<1x4xf32, #tpu.memory_space<vmem>>, %arg4: memref<4x16xf32, #tpu.memory_space<vmem>>, %arg5: memref<1x16xf32, #tpu.memory_space<vmem>>, %arg6: memref<2x16x144xf32, #tpu.memory_space<vmem>>) attributes {dimension_semantics = [#tpu.dimension_semantics<parallel>], iteration_bounds = array<i64: 2>, scalar_prefetch = 0 : i64, scratch_operands = 0 : i64, tpu.core_type = #tpu.core_type<tc>, window_params = [{transform_indices = @transform_0, window_bounds = array<i64: 2, 16, 144>}, {pipeline_mode = #tpu.pipeline_mode<synchronous>, transform_indices = @transform_1, window_bounds = array<i64: 16, 4>}, {pipeline_mode = #tpu.pipeline_mode<synchronous>, transform_indices = @transform_2, window_bounds = array<i64: 1, 4>}, {pipeline_mode = #tpu.pipeline_mode<synchronous>, transform_indices = @transform_3, window_bounds = array<i64: 4, 16>}, {pipeline_mode = #tpu.pipeline_mode<synchronous>, transform_indices = @transform_4, window_bounds = array<i64: 1, 16>}, {transform_indices = @transform_5, window_bounds = array<i64: 2, 16, 144>}]} {
    %c0 = arith.constant 0 : index
    %c0_0 = arith.constant 0 : index
    %c0_1 = arith.constant 0 : index
    %0 = vector.load %arg1[%c0, %c0_0, %c0_1] : memref<2x16x144xf32, #tpu.memory_space<vmem>>, vector<2x16x144xf32>
    %cst = arith.constant dense<0.000000e+00> : vector<2x16xf32>
    %1 = vector.multi_reduction <add>, %0, %cst [2] : vector<2x16x144xf32> to vector<2x16xf32>
    %cst_2 = arith.constant 0.0069444445 : f32
    %2 = vector.broadcast %cst_2 : f32 to vector<2x16xf32>
    %3 = arith.mulf %1, %2 : vector<2x16xf32>
    %c0_3 = arith.constant 0 : index
    %c0_4 = arith.constant 0 : index
    %4 = vector.load %arg2[%c0_3, %c0_4] : memref<16x4xf32, #tpu.memory_space<vmem>>, vector<16x4xf32>
    %cst_5 = arith.constant dense<0.000000e+00> : vector<2x4xf32>
    %5 = tpu.matmul %3, %4, %cst_5 {dimension_numbers = #tpu.dot_dimension_numbers<[1], [0], [0], [1], [0, 0, 1, 1], [], []>} : vector<2x16xf32>, vector<16x4xf32>, vector<2x4xf32> -> vector<2x4xf32>
    %c0_6 = arith.constant 0 : index
    %c0_7 = arith.constant 0 : index
    %6 = vector.load %arg3[%c0_6, %c0_7] : memref<1x4xf32, #tpu.memory_space<vmem>>, vector<1x4xf32>
    %7 = vector.broadcast %6 : vector<1x4xf32> to vector<2x4xf32>
    %8 = arith.addf %5, %7 : vector<2x4xf32>
    %cst_8 = arith.constant 0.000000e+00 : f32
    %9 = vector.broadcast %cst_8 : f32 to vector<2x4xf32>
    %10 = arith.maximumf %8, %9 : vector<2x4xf32>
    %c0_9 = arith.constant 0 : index
    %c0_10 = arith.constant 0 : index
    %11 = vector.load %arg4[%c0_9, %c0_10] : memref<4x16xf32, #tpu.memory_space<vmem>>, vector<4x16xf32>
    %cst_11 = arith.constant dense<0.000000e+00> : vector<2x16xf32>
    %12 = tpu.matmul %10, %11, %cst_11 {dimension_numbers = #tpu.dot_dimension_numbers<[1], [0], [0], [1], [0, 0, 1, 1], [], []>} : vector<2x4xf32>, vector<4x16xf32>, vector<2x16xf32> -> vector<2x16xf32>
    %c0_12 = arith.constant 0 : index
    %c0_13 = arith.constant 0 : index
    %13 = vector.load %arg5[%c0_12, %c0_13] : memref<1x16xf32, #tpu.memory_space<vmem>>, vector<1x16xf32>
    %14 = vector.broadcast %13 : vector<1x16xf32> to vector<2x16xf32>
    %15 = arith.addf %12, %14 : vector<2x16xf32>
    %16 = arith.negf %15 : vector<2x16xf32>
    %17 = math.exp %16 : vector<2x16xf32>
    %cst_14 = arith.constant 1.000000e+00 : f32
    %18 = vector.broadcast %cst_14 : f32 to vector<2x16xf32>
    %19 = arith.addf %18, %17 : vector<2x16xf32>
    %20 = arith.divf %18, %19 : vector<2x16xf32>
    %21 = vector.shape_cast %20 : vector<2x16xf32> to vector<2x16x1xf32>
    %22 = vector.broadcast %21 : vector<2x16x1xf32> to vector<2x16x144xf32>
    %23 = arith.mulf %0, %22 : vector<2x16x144xf32>
    %c0_15 = arith.constant 0 : index
    %c0_16 = arith.constant 0 : index
    %c0_17 = arith.constant 0 : index
    %24 = vector.load %arg6[%c0_15, %c0_16, %c0_17] : memref<2x16x144xf32, #tpu.memory_space<vmem>>, vector<2x16x144xf32>
    tpu.vector_store %arg6[%c0_15, %c0_16, %c0_17], %23 {strides = array<i32>} : memref<2x16x144xf32, #tpu.memory_space<vmem>>, vector<2x16x144xf32>,
    return
  }
  func.func @transform_0(%arg0: i32) -> (i32, i32, i32) {
    %c0_i32 = arith.constant 0 : i32
    %c0_i32_0 = arith.constant 0 : i32
    %c0_i32_1 = arith.constant 0 : i32
    return %arg0, %c0_i32, %c0_i32_0 : i32, i32, i32
  }
  func.func @transform_1(%arg0: i32) -> (i32, i32) {
    %c0_i32 = arith.constant 0 : i32
    %c0_i32_0 = arith.constant 0 : i32
    %c0_i32_1 = arith.constant 0 : i32
    return %c0_i32, %c0_i32_0 : i32, i32
  }
  func.func @transform_2(%arg0: i32) -> (i32, i32) {
    %c0_i32 = arith.constant 0 : i32
    %c0_i32_0 = arith.constant 0 : i32
    %c0_i32_1 = arith.constant 0 : i32
    return %c0_i32, %c0_i32_0 : i32, i32
  }
  func.func @transform_3(%arg0: i32) -> (i32, i32) {
    %c0_i32 = arith.constant 0 : i32
    %c0_i32_0 = arith.constant 0 : i32
    %c0_i32_1 = arith.constant 0 : i32
    return %c0_i32, %c0_i32_0 : i32, i32
  }
  func.func @transform_4(%arg0: i32) -> (i32, i32) {
    %c0_i32 = arith.constant 0 : i32
    %c0_i32_0 = arith.constant 0 : i32
    %c0_i32_1 = arith.constant 0 : i32
    return %c0_i32, %c0_i32_0 : i32, i32
  }
  func.func @transform_5(%arg0: i32) -> (i32, i32, i32) {
    %c0_i32 = arith.constant 0 : i32
    %c0_i32_0 = arith.constant 0 : i32
    %c0_i32_1 = arith.constant 0 : i32
    return %arg0, %c0_i32, %c0_i32_0 : i32, i32, i32
  }
}

</mosaic_0001>

<bundles_post_ra>
// kernel: tpu_custom_call.1
= control target key start
LH: loop header
LB: loop body
LE: loop exit
PB: predicated region body
PF: predicated region fallthrough
CT: control target
= control target key end

     0   :  { %10 = vsyncpa [#allocation3], 0  ;;  %s1036_s0 = inlined_call_operand.hbm [shape: f32[3,16,144], index: 0, kind: input, shape index: {}]   ;;  %s1037_s1 = inlined_call_operand.vmem [shape: f32[16,4], index: 1, kind: input, shape index: {}]   ;;  %s1038_s2 = inlined_call_operand.vmem [shape: f32[1,4], index: 2, kind: input, shape index: {}]   ;;  %s1039_s3 = inlined_call_operand.vmem [shape: f32[4,16], index: 3, kind: input, shape index: {}]   ;;  %s1040_s4 = inlined_call_operand.vmem [shape: f32[1,16], index: 4, kind: input, shape index: {}]   ;;  %s1041_s5 = inlined_call_operand.hbm [shape: f32[3,16,144], index: 5, kind: output, shape index: {}]  }
   0x1   :  { %12 = vsyncpa [#allocation3 + $0x1], 0 }
   0x2   :  { %13 = vsyncpa [#allocation4], 0 }
   0x3   :  { %15 = vsyncpa [#allocation4 + $0x1], 0  ;;  %s792_s18 = smov 0   ;;  %s794_s19 = smov 0  }
   0x4   :  { %s796_s20 = smov 0   ;;  %s798_s21 = smov 0  }
   0x5 LB: > { %s813_s22 = sadd.s32 4294967295, %s754_s21   ;;  %s538_s23 = sadd.s32 4294967294, %s754_s21   ;;  %s754_s21 = sphi %s798_s21, %s1054_s21   ;;  %s750_s20 = sphi %s796_s20, %s1053_s20   ;;  %s746_s19 = sphi %s794_s19, %s1052_s19   ;;  %s742_s18 = sphi %s792_s18, %s1051_s18  }
   0x6   : > { %s817_s24 = sadd.s32 1, %s754_s21   ;;  %s28_s25 = sadd.s32 1, %s750_s20 }
   0x7   : > { %s25_s26 = ssub.s32 %s754_s21, %s817_s24  ;;  %p35_p0 = scmp.ne.s32.totalorder %s750_s20, %s746_s19 }
   0x8   : > { %p26_p1 = scmp.eq.s32.totalorder %s25_s26, 0  ;;  %p36_p2 = scmp.eq.s32.totalorder %s754_s21, 0 }
   0x9   : > { %p41_p3 = scmp.ne.s32.totalorder %s746_s19, %s742_s18  ;;  %p42_p4 = scmp.eq.s32.totalorder %s813_s22, 0 }
   0xa   : > { %s829_s27 = scalar_select %p26_p1, %s750_s20, %s28_s25  }
   0xb   : > { %p37_p5 = por %p36_p2, %p35_p0  ;;  %p831_p6 = por %p42_p4, %p41_p3 }
   0xc   : > { %p149_p7 = scmp.eq.s32.totalorder %s813_s22, 1  ;;  %p155_p8 = scmp.eq.s32.totalorder %s538_s23, 1 }
   0xd   : > { %p1043_p11 = scmp.ge.s32.totalorder %s754_s21, 2 }
   0xe   : > { %p836_p9 = por %p149_p7, %p35_p0  ;;  %p840_p10 = por %p155_p8, %p41_p3 }
   0xf   : > { %183 = sbr.rel (%p1043_p11) target bundleno = 57 (0x39), region = 32 }
  0x14   : > { %186 = sbr.rel (!%p37_p5) target bundleno = 57 (0x39), region = 36  ;;  %s187_s6 = sand.u32 (%p37_p5), 1, %s750_s20  }
  0x15   : > { %s542_s7 = sshll.u32 (%p37_p5), %s754_s21, 1  ;;  %s541_s8 = sshll.u32 (%p37_p5), %s187_s6, 6 }
  0x16   : > { %s193_s9 = ssub.s32 (%p37_p5), 3, %s542_s7  ;;  %s852_s13 = scalar_lea.sflag (%p37_p5), [#allocation3], %s187_s6 }
  0x17   : > { %p194_p12 = scmp.lt.s32.totalorder (%p37_p5), %s193_s9, 2  ;;  %s191_s14 = scalar_lea.vmem (%p37_p5), [#allocation2], %s541_s8 }
  0x19   : > { %s1056_s9 = smov (!%p194_p12, %s193_s9), 2 }
  0x1a   : > { %s573_s10 = sshll.u32 %s1056_s9, 5 }
  0x1b   : > { %s199_s11 = ssub.s32 64, %s573_s10 }
  0x1c   : > { %s200_s12 = sshll.u32 %s199_s11, 4 }
  0x1d   : > { %201 = vsyncadd %s852_s13, %s200_s12  ;;  %p855_p13 = scmp.ne.s32.totalorder %s573_s10, 0  ;;  %s575_s16 = sshll.u32 %s754_s21, 6 }
  0x1e   : > { %s205_s25 = scalar_lea.hbm %s1036_s0, %s575_s16  ;;  %s863_s26 = sshll.u32 %s191_s14, 4  ;;  %s211_s26 = int_to_ptr.vmem [resolvable:$true] %s863_s26 }
  0x1f   : > { %s208_s6 = sshll.u32 %s205_s25, 4  ;;  %s1042_s7 = sshll.u32 %s1056_s9, 9  ;;  %s866_s6 = int_to_ptr.hbm [resolvable:$true] %s208_s6 }
  0x20   : > { %s638_s8 = sshra.s32 %s866_s6, 4  ;;  %s640_s10 = sshrl.u32 %s1042_s7, 4  ;;  %s639_s8 = int_to_ptr.hbm [resolvable:$true] %s638_s8 }
  0x21   : > { %s645_s11 = scalar_lea.hbm %s639_s8, %s640_s10  ;;  %s649_s14 = scalar_lea.hbm %s1036_s0, 96 }
  0x22   : > { %p646_p0 = scmp.ne.s32.totalorder %s639_s8, %s645_s11  ;;  %p650_p3 = scmp.lt.s32.totalorder %s639_s8, %s1036_s0 }
  0x23   : > { %p651_p4 = scmp.lt.s32.totalorder %s649_s14, %s645_s11 }
  0x24   : > { %p647_p1 = pnand %p646_p0, %p855_p13 }
  0x25   : > { %p652_p5 = por %p651_p4, %p650_p3 }
  0x26   : > { %p648_p2 = pneg %p647_p1 }
  0x28   : > { %p653_p7 = pnand %p652_p5, %p648_p2 }
  0x2a   : > { %656 = shalt.err (!%p653_p7)
}
  0x2b   : > { %s657_s25 = sshra.s32 %s211_s26, 4  ;;  %s756_s12 = smov [#allocation2]   ;;  %s658_s25 = int_to_ptr.vmem [resolvable:$true] %s657_s25 }
  0x2c   : > { %s664_s7 = scalar_lea.vmem %s658_s25, %s640_s10  ;;  %s668_s16 = scalar_lea.vmem %s756_s12, 128 }
  0x2d   : > { %p665_p8 = scmp.ne.s32.totalorder %s658_s25, %s664_s7  ;;  %p670_p1 = scmp.lt.s32.totalorder %s668_s16, %s664_s7 }
  0x2f   : > { %p666_p12 = pnand %p665_p8, %p855_p13 }
  0x31   : > { %p667_p0 = pneg %p666_p12 }
  0x33   : > { %p672_p11 = pnand %p670_p1, %p667_p0 }
  0x35   : > { %675 = shalt.err (!%p672_p11)
}
  0x36   : > { %s757_s8 = smov 256   ;;  %s758_s11 = smov 16  }
  0x37   : > { %s1048_s14 = sshll.u32 %s1056_s9, 9 }
  0x38   : > { %216 = dma.hbm_to_vmem [thread:$0]  (%p855_p13), %s866_s6, %s1048_s14, %s211_s26, %s852_s13, %s757_s8, %s757_s8, %s758_s11  }
  0x39 PF: > { %p552_p2 = scmp.ge.s32.totalorder %s754_s21, 1  ;;  %p218_p3 = scmp.lt.s32.totalorder %s754_s21, 3 }
  0x3b   : > { %p219_p4 = pnand %p552_p2, %p218_p3 }
  0x3c   : > { %s895_s7 = sand.u32 (!%p219_p4), 1, %s746_s19  }
  0x3d   : > { %222 = sbr.rel (%p219_p4) target bundleno = 642 (0x282), region = 40  ;;  %s553_s10 = sshll.u32 (!%p219_p4), %s895_s7, 6 }
  0x3e   : > { %s225_s15 = scalar_lea.sflag (!%p219_p4), [#allocation3], %s895_s7  ;;  %s228_s9 = scalar_lea.vmem (!%p219_p4), [#allocation2], %s553_s10 }
  0x42   : > { %733 = dma.done.wait (%p831_p6), %s225_s15, 1024  }
  0x43   : > { %735 = vsyncadd (%p831_p6), %s225_s15, 4294966272  ;;  %vm278_vm0 = vcmask 130048   ;;  %v905_v0 = vld [vmem:[%s228_s9 + $0x20] sm:$0xff]  ;;  %v907_v1 = vld [vmem:[%s228_s9 + $0x28] sm:$0xff]  ;;  %v309_v19 = vlaneseq  ;;  %vm314_vm1 = vcmask 130112   ;;  %vm319_vm2 = vcmask 1041409  }
  0x44   : > { %v909_v2 = vld [vmem:[%s228_s9] sm:$0xff]  ;;  %v287_v3 = vsel %vm278_vm0, %v907_v1, 0.0  ;;  %v913_v4 = vld [vmem:[%s228_s9 + $0x8] sm:$0xff]  ;;  %v918_v7 = vld [vmem:[%s228_s9 + $0x38] sm:$0xff]  ;;  %vm353_vm3 = vcmask 1043456   ;;  %vm349_vm4 = vcmask 31744  }
  0x45   : > { %v288_v5 = vadd.f32 %v287_v3, %v905_v0  ;;  %v279_v6 = vsel %vm278_vm0, %v913_v4, 0.0  ;;  %v921_v9 = vld [vmem:[%s228_s9 + $0x18] sm:$0xff]  ;;  %v923_v10 = vld [vmem:[%s228_s9 + $0x30] sm:$0xff]  ;;  %v291_v11 = vsel %vm278_vm0, %v918_v7, 0.0  ;;  %v300_v16 = vld [vmem:[%s1037_s1 + $0x8] sm:$0xff]  ;;  %v310_v21 = vand.u32 127, %v309_v19 }
  0x46   : > { %v280_v8 = vadd.f32 %v279_v6, %v909_v2  ;;  %v927_v12 = vld [vmem:[%s228_s9 + $0x10] sm:$0xff]  ;;  %v283_v13 = vsel %vm278_vm0, %v921_v9, 0.0  ;;  %v292_v14 = vadd.f32 %v291_v11, %v923_v10  ;;  %v299_v17 = vld [vmem:[%s1037_s1] sm:$0xff]  ;;  %337 = vmatpush.msra.mxu0 %v300_v16  ;;  %v398_v41 = vshrl.u32 %v309_v19, 7  ;;  %s953_s11 = scalar_lea.vmem [#allocation5], %s553_s10  ;;  %s439_s14 = scalar_lea.sflag [#allocation4], %s895_s7 }
  0x47   : > { %289 = vadd.xlane.f32.xlu1 %v288_v5  ;;  %v284_v15 = vadd.f32 %v283_v13, %v927_v12  ;;  %v312_v23 = vadd.s32 4294967288, %v310_v21  ;;  %v344_v36 = vld [vmem:[%s1039_s3] sm:$0xf]  ;;  %s560_s10 = sshll.u32 (%p836_p9), %s813_s22, 1 }
  0x48   : > { %281 = vadd.xlane.f32.xlu0 %v280_v8  ;;  %338 = vmatpush.msra.mxu0 %v299_v17  ;;  %v632_v37 = vld [vmem:[%s1038_s2] ss:$0 sm:$0xff]  ;;  %v405_v42 = vadd.s32 8, %v398_v41  ;;  %s447_s15 = ssub.s32 (%p836_p9), 3, %s560_s10 }
  0x49   : > { %556 = vmatpush.msk.msra.mxu1 %vm353_vm3, %v344_v36  ;;  %629 = vset.pattern.permute.xlu0 %v398_v41  ;;  %v633_v43 = vld [vmem:[%s1040_s4] ss:$0 sm:$0xff]  ;;  %p448_p6 = scmp.lt.s32.totalorder (%p836_p9), %s447_s15, 2 }
  0x4a   : > { %627 = vset.pattern.permute.xlu2 %v398_v41  ;;  %630 = vset.pattern.permute.xlu1 %v405_v42 }
  0x4f   : > { %293 = vadd.xlane.f32.xlu1 %v292_v14 }
  0x50   : > { %285 = vadd.xlane.f32.xlu0 %v284_v15 }
  0xba   : > { %v290_v18 = vpop.xlane.xlu1 %289 }
  0xbb   : > { %v282_v20 = vpop.xlane.xlu0 %281  ;;  %v297_v22 = vmul.f32 0.0069444445, %v290_v18 }
  0xbc   : > { %v295_v24 = vmul.f32 0.0069444445, %v282_v20 }
  0xbd   : > { %v316_v29 = vperm.slane %v297_v22, %v310_v21 }
  0xbe   : > { %v311_v31 = vperm.slane %v295_v24, %v310_v21 }
  0xc2   : > { %v294_v25 = vpop.xlane.xlu1 %293 }
  0xc3   : > { %v298_v26 = vmul.f32 0.0069444445, %v294_v25  ;;  %v286_v27 = vpop.xlane.xlu0 %285 }
  0xc4   : > { %v296_v28 = vmul.f32 0.0069444445, %v286_v27 }
  0xc5   : > { %v317_v30 = vperm.slane %v298_v26, %v312_v23 }
  0xc6   : > { %v313_v32 = vperm.slane %v296_v28, %v312_v23 }
  0xc7   : > { %v318_v33 = vsel %vm314_vm1, %v317_v30, %v316_v29 }
  0xc8   : > { %v315_v34 = vsel %vm314_vm1, %v313_v32, %v311_v31 }
  0xc9   : > { %v320_v35 = vsel %vm319_vm2, %v318_v33, %v315_v34 }
  0xca   : > { %555 = vmatmul.msk.f32.vlgmr.msra.gmra.mxu0 %vm278_vm0, %v320_v35 }
 0x147   : > { %v340_v38 = vpop.f32.mrf.mxu0 }
 0x148   : > { %v341_v39 = vadd.f32 %v632_v37, %v340_v38 }
 0x14a   : > { %v343_v40 = vmax.f32 %v341_v39, 0.0 }
 0x14c   : > { %557 = vmatmul.msk.f32.vlgmr.msra.gmra.mxu1 %vm349_vm4, %v343_v40 }
 0x1c9   : > { %v374_v44 = vpop.f32.mrf.mxu1 }
 0x1ca   : > { %v375_v45 = vadd.f32 %v633_v43, %v374_v44 }
 0x1cc   : > { %v558_v46 = vmul.f32 -1.442695, %v375_v45 }
 0x1ce   : > { %634 = vpow2.f32 %v558_v46 }
 0x1d4   : > { %v635_v47 = vpop.eup %634 }
 0x1d5   : > { %v380_v48 = vadd.f32 1.0, %v635_v47 }
 0x1d7   : > { %636 = vrcp.f32 %v380_v48  ;;  %v392_v52 = vand.u32 2147483648, %v380_v48  ;;  %v390_v54 = vand.u32 2147483647, %v380_v48  ;;  %vm386_vm6 = vweird.f32 %v380_v48 }
 0x1d9   : > { %v393_v56 = vor.u32 1.1754944e-38, %v392_v52  ;;  %vm391_vm8 = vcmp.eq.f32.partialorder %v390_v54, 8.507059e+37 }
 0x1dd   : > { %v637_v49 = vpop.eup %636 }
 0x1de   : > { %v382_v50 = vmul.f32 %v637_v49, %v380_v48  ;;  %vm387_vm5 = vweird.f32 %v637_v49 }
 0x1df   : > { %vm388_vm7 = vmor %vm386_vm6, %vm387_vm5 }
 0x1e0   : > { %v383_v51 = vsub.f32 1.0, %v382_v50 }
 0x1e2   : > { %v384_v53 = vmul.f32 %v637_v49, %v383_v51 }
 0x1e4   : > { %v385_v55 = vadd.f32 %v637_v49, %v384_v53 }
 0x1e6   : > { %v389_v57 = vsel %vm388_vm7, %v637_v49, %v385_v55 }
 0x1e7   : > { %v394_v58 = vsel %vm391_vm8, %v393_v56, %v389_v57 }
 0x1e8   : > { %v409_v59 = vperm.slane %v394_v58, 1  ;;  %v396_v60 = vperm.slane %v394_v58, 0 }
 0x1ea   : > { %420 = vperm.xlu1 %630, %v409_v59   ;;  %414 = vperm.xlu0 %629, %v409_v59  }
 0x1eb   : > { %401 = vperm.xlu2 %627, %v396_v60  }
 0x1f2   : > { %631 = vset.pattern.permute.xlu0 %v405_v42 }
 0x1f3   : > { %628 = vset.pattern.permute.xlu2 %v405_v42 }
 0x1fb   : > { %407 = vperm.xlu2 %628, %v396_v60  }
 0x245   : > { %v402_v61 = vpop.permute.xlu2 %401 }
 0x246   : > { %v422_v62 = vmul.f32 %v402_v61, %v909_v2  ;;  %v423_v63 = vmul.f32 %v402_v61, %v913_v4 }
 0x248   : > { %430 = vst [vmem:[%s953_s11] sm:$0xff] %v422_v62 }
 0x249   : > { %431 = vst.msk [vmem:[%s953_s11 + $0x8] sm:$0xff] %vm278_vm0, %v423_v63 }
 0x255   : > { %v408_v3 = vpop.permute.xlu2 %407 }
 0x256   : > { %v424_v2 = vmul.f32 %v408_v3, %v927_v12  ;;  %v425_v4 = vmul.f32 %v408_v3, %v921_v9 }
 0x258   : > { %432 = vst [vmem:[%s953_s11 + $0x10] sm:$0xff] %v424_v2 }
 0x259   : > { %433 = vst.msk [vmem:[%s953_s11 + $0x18] sm:$0xff] %vm278_vm0, %v425_v4 }
 0x25c   : > { %v421_v5 = vpop.permute.xlu1 %420  ;;  %v415_v6 = vpop.permute.xlu0 %414 }
 0x25d   : > { %v428_v8 = vmul.f32 %v421_v5, %v923_v10  ;;  %v429_v11 = vmul.f32 %v421_v5, %v918_v7  ;;  %v426_v13 = vmul.f32 %v415_v6, %v905_v0  ;;  %v427_v14 = vmul.f32 %v415_v6, %v907_v1 }
 0x25e   : > { %445 = sbr.rel (!%p836_p9) target bundleno = 642 (0x282), region = 48 }
 0x25f   : > { %436 = vst [vmem:[%s953_s11 + $0x30] sm:$0xff] %v428_v8 }
 0x260   : > { %437 = vst.msk [vmem:[%s953_s11 + $0x38] sm:$0xff] %vm278_vm0, %v429_v11 }
 0x261   : > { %434 = vst [vmem:[%s953_s11 + $0x20] sm:$0xff] %v426_v13 }
 0x262   : > { %435 = vst.msk [vmem:[%s953_s11 + $0x28] sm:$0xff] %vm278_vm0, %v427_v14 }
 0x263   : > { %s1058_s15 = smov (!%p448_p6, %s447_s15), 2 }
 0x264   : > { %s579_s9 = sshll.u32 %s1058_s15, 5 }
 0x265   : > { %s453_s28 = ssub.s32 64, %s579_s9 }
 0x266   : > { %s454_s13 = sshll.u32 %s453_s28, 4 }
 0x267   : > { %455 = vsyncadd %s439_s14, %s454_s13  ;;  %p982_p11 = scmp.ne.s32.totalorder %s579_s9, 0  ;;  %s581_s26 = sshll.u32 %s813_s22, 6 }
 0x268   : > { %s459_s23 = scalar_lea.hbm %s1041_s5, %s581_s26  ;;  %s462_s25 = sshll.u32 %s953_s11, 4  ;;  %s991_s25 = int_to_ptr.vmem [resolvable:$true] %s462_s25 }
 0x269   : > { %s464_s12 = sshll.u32 %s459_s23, 4  ;;  %s583_s16 = sshll.u32 %s1058_s15, 9  ;;  %s993_s12 = int_to_ptr.hbm [resolvable:$true] %s464_s12 }
 0x26a   : > { %s677_s8 = sshra.s32 %s991_s25, 4  ;;  %s679_s10 = sshrl.u32 %s583_s16, 4  ;;  %s678_s8 = int_to_ptr.vmem [resolvable:$true] %s677_s8 }
 0x26b   : > { %s684_s9 = scalar_lea.vmem %s678_s8, %s679_s10  ;;  %s759_s22 = smov [#allocation5]  }
 0x26c   : > { %p685_p9 = scmp.ne.s32.totalorder %s678_s8, %s684_s9  ;;  %s688_s28 = scalar_lea.vmem %s759_s22, 128 }
 0x26d   : > { %p690_p7 = scmp.lt.s32.totalorder %s688_s28, %s684_s9 }
 0x26e   : > { %p686_p13 = pnand %p685_p9, %p982_p11 }
 0x270   : > { %p687_p5 = pneg %p686_p13 }
 0x272   : > { %p692_p8 = pnand %p690_p7, %p687_p5 }
 0x274   : > { %695 = shalt.err (!%p692_p8)
}
 0x275   : > { %s696_s11 = sshra.s32 %s993_s12, 4  ;;  %s707_s17 = scalar_lea.hbm %s1041_s5, 96  ;;  %s697_s11 = int_to_ptr.hbm [resolvable:$true] %s696_s11 }
 0x276   : > { %s703_s13 = scalar_lea.hbm %s697_s11, %s679_s10  ;;  %p708_p2 = scmp.lt.s32.totalorder %s697_s11, %s1041_s5 }
 0x277   : > { %p704_p12 = scmp.ne.s32.totalorder %s697_s11, %s703_s13  ;;  %p709_p3 = scmp.lt.s32.totalorder %s707_s17, %s703_s13 }
 0x279   : > { %p705_p0 = pnand %p704_p12, %p982_p11  ;;  %p710_p4 = por %p709_p3, %p708_p2 }
 0x27b   : > { %p706_p1 = pneg %p705_p0 }
 0x27d   : > { %p711_p6 = pnand %p710_p4, %p706_p1 }
 0x27f   : > { %714 = shalt.err (!%p711_p6)
}
 0x280   : > { %s760_s9 = smov 256   ;;  %s761_s10 = smov 16  }
 0x281   : > { %470 = dma.vmem_to_hbm [thread:$0]  (%p982_p11), %s991_s25, %s583_s16, %s993_s12, %s439_s14, %s760_s9, %s760_s9, %s761_s10  }
 0x282 PF: > { %s479_s22 = sand.u32 1, %s742_s18   ;;  %p1050_p9 = scmp.ge.s32.totalorder %s754_s21, 2 }
 0x283   : > { %s480_s28 = scalar_lea.sflag [#allocation4], %s479_s22 }
 0x284   : > { %p587_p13 = pnand %p1050_p9, %p840_p10 }
 0x286   : > { %p588_p5 = pneg %p587_p13 }
 0x288   : > { %737 = dma.done.wait (%p588_p5), %s480_s28, 1024  }
 0x289   : > { %739 = vsyncadd (%p588_p5), %s480_s28, 4294966272  ;;  %p18_p7 = scmp.ge.s32.totalorder %s817_s24, 4   ;;  %s1051_s18 = smov %s746_s19 }
 0x28a   : > { %s1052_s19 = smov %s750_s20  ;;  %s1053_s20 = smov %s829_s27 }
 0x28b   : > { %s1054_s21 = smov %s817_s24  ;;  %20 = sbr.rel (!%p18_p7) target bundleno = 5 (0x5), region = 85 }
 0x290   :  { %486 = vsyncpa [#allocation3], 1 }
 0x291   :  { %488 = vsyncpa [#allocation3 + $0x1], 1 }
 0x292   :  { %489 = vsyncpa [#allocation4], 1 }
 0x293   :  { %491 = vsyncpa [#allocation4 + $0x1], 1 }

</bundles_post_ra>
